<compile_context>
chip_gen: v7x
topology: tpu7x:2x2x1
jax: 0.10.0
libtpu: 0.0.40
codegen_flags: <defaults>
</compile_context>

<pallas_src>
import jax
import jax.numpy as jnp
import numpy as np
from jax.experimental import pallas as pl
from jax.experimental.pallas import tpu as pltpu


def _attention_cls_kernel(q_ref, w_ref, h_ref, o_ref):
    """q_ref: VMEM [1, H], w_ref: VMEM [H, A], h_ref: VMEM [tb, L, H], o_ref: VMEM [tb, A]."""
    h = h_ref[...].astype(jnp.float32)                  # [tb, L, H]
    q = q_ref[...].astype(jnp.float32)                  # [1, H]

    # scores[b, l] = sum_h q[h] * h[b, l, h]   (lane-axis reduce, XLU)
    scores = jnp.sum(h * q[None, :, :], axis=-1)        # [tb, L]

    # numerically-stable softmax over the layer axis
    m = jnp.max(scores, axis=-1, keepdims=True)
    e = jnp.exp(scores - m)
    att = e / jnp.sum(e, axis=-1, keepdims=True)        # [tb, L]

    # context[b, h] = sum_l att[b, l] * h[b, l, h]
    ctx = jnp.sum(att[:, :, None] * h, axis=1)          # [tb, H]

    # projection: out = ctx @ w_h  (== w_h^T @ v in the PyTorch code) -> MXU, f32 acc
    out = jnp.dot(ctx, w_ref[...].astype(jnp.float32),
                  preferred_element_type=jnp.float32)   # [tb, A]
    o_ref[...] = out.astype(o_ref.dtype)


@jax.jit
def hidden_attention_cls_emb(hidden_states, q, w_h):
    """hidden_states: tuple of [B, S, H] arrays (len = num_hidden_layers + 1).

    q: f32[1, H], w_h: f32[H, att_dim]. Returns f32[B, att_dim].
    """
    num_hidden_layers = len(hidden_states) - 1

    # Hoist the CLS slice: only seq position 0 of layers 1..num_hidden_layers is used.
    cls_rows = [hidden_states[idx][:, 0] for idx in range(1, num_hidden_layers + 1)]
    h = jnp.stack(cls_rows, axis=1)                     # [B, L, H]
    B, L, H = h.shape
    A = w_h.shape[1]

    # Batch tile: a multiple of 8 sublane rows when possible, else the full batch
    # (full-extent blocks satisfy the (8,128) rule).
    tb = 8 if (B % 8 == 0) else B
    grid = (B // tb,)

    return pl.pallas_call(
        _attention_cls_kernel,
        out_shape=jax.ShapeDtypeStruct((B, A), jnp.float32),
        grid_spec=pltpu.PrefetchScalarGridSpec(
            num_scalar_prefetch=0,
            grid=grid,
            in_specs=[
                pl.BlockSpec((1, H), lambda i: (0, 0)),         # q (shared across tiles)
                pl.BlockSpec((H, A), lambda i: (0, 0)),         # w_h (shared across tiles)
                pl.BlockSpec((tb, L, H), lambda i: (i, 0, 0)),  # per-layer CLS hidden states
            ],
            out_specs=pl.BlockSpec((tb, A), lambda i: (i, 0)),
        ),
        compiler_params=pltpu.CompilerParams(
            dimension_semantics=("parallel",)),
    )(q, w_h, h)


def _reference(hidden_states, q, w_h):
    num_hidden_layers = len(hidden_states) - 1
    h = jnp.stack([hidden_states[i][:, 0] for i in range(1, num_hidden_layers + 1)],
                  axis=-1)                              # [B, H, L]
    h = jnp.transpose(h, (0, 2, 1))                     # [B, L, H]
    scores = jnp.einsum('oh,blh->bol', q, h)[:, 0, :]   # [B, L]
    att = jax.nn.softmax(scores, axis=-1)
    v = jnp.einsum('bl,blh->bh', att, h)                # [B, H]
    return jnp.einsum('hd,bh->bd', w_h, v)              # [B, A]


if __name__ == "__main__":
    # Module config: 12 hidden layers -> 13 hidden-state tensors; output_dim = H = att_dim.
    num_hidden_layers = 12
    B, S, H = 2, 8, 32

    key = jax.random.PRNGKey(0)
    k_hs, k_q, k_w = jax.random.split(key, 3)
    hs_keys = jax.random.split(k_hs, num_hidden_layers + 1)
    hidden_states = tuple(
        jax.random.normal(k, (B, S, H), dtype=jnp.float32) for k in hs_keys
    )
    # q ~ N(0, 0.1) [1, H]; w_h ~ N(0, 0.1) [H, att_dim]
    q = 0.1 * jax.random.normal(k_q, (1, H), dtype=jnp.float32)
    w_h = 0.1 * jax.random.normal(k_w, (H, H), dtype=jnp.float32)

    out = hidden_attention_cls_emb(hidden_states, q, w_h)
    out = jax.block_until_ready(out)

    ref = _reference(hidden_states, q, w_h)
    np.testing.assert_allclose(np.asarray(out), np.asarray(ref), rtol=1e-5, atol=1e-5)
    assert out.shape == (B, H)

    print("KERNEL_OK")
</pallas_src>

<mosaic_0001>
module attributes {stable_mosaic.version = 11 : i64} {
  func.func @_attention_cls_kernel(%arg0: i32, %arg1: memref<1x32xf32, #tpu.memory_space<vmem>>, %arg2: memref<32x32xf32, #tpu.memory_space<vmem>>, %arg3: memref<2x12x32xf32, #tpu.memory_space<vmem>>, %arg4: memref<2x32xf32, #tpu.memory_space<vmem>>) attributes {dimension_semantics = [#tpu.dimension_semantics<parallel>], iteration_bounds = array<i64: 1>, scalar_prefetch = 0 : i64, scratch_operands = 0 : i64, tpu.core_type = #tpu.core_type<tc>, window_params = [{pipeline_mode = #tpu.pipeline_mode<synchronous>, transform_indices = @transform_0, window_bounds = array<i64: 1, 32>}, {pipeline_mode = #tpu.pipeline_mode<synchronous>, transform_indices = @transform_1, window_bounds = array<i64: 32, 32>}, {transform_indices = @transform_2, window_bounds = array<i64: 2, 12, 32>}, {transform_indices = @transform_3, window_bounds = array<i64: 2, 32>}]} {
    %c0 = arith.constant 0 : index
    %c0_0 = arith.constant 0 : index
    %c0_1 = arith.constant 0 : index
    %0 = vector.load %arg3[%c0, %c0_0, %c0_1] : memref<2x12x32xf32, #tpu.memory_space<vmem>>, vector<2x12x32xf32>
    %c0_2 = arith.constant 0 : index
    %c0_3 = arith.constant 0 : index
    %1 = vector.load %arg1[%c0_2, %c0_3] : memref<1x32xf32, #tpu.memory_space<vmem>>, vector<1x32xf32>
    %2 = vector.shape_cast %1 : vector<1x32xf32> to vector<1x1x32xf32>
    %3 = vector.broadcast %2 : vector<1x1x32xf32> to vector<2x12x32xf32>
    %4 = arith.mulf %0, %3 : vector<2x12x32xf32>
    %cst = arith.constant dense<0.000000e+00> : vector<2x12xf32>
    %5 = vector.multi_reduction <add>, %4, %cst [2] : vector<2x12x32xf32> to vector<2x12xf32>
    %cst_4 = arith.constant dense<0xFF800000> : vector<2xf32>
    %6 = vector.multi_reduction <maximumf>, %5, %cst_4 [1] : vector<2x12xf32> to vector<2xf32>
    %7 = vector.shape_cast %6 : vector<2xf32> to vector<2x1xf32>
    %8 = vector.broadcast %7 : vector<2x1xf32> to vector<2x12xf32>
    %9 = arith.subf %5, %8 : vector<2x12xf32>
    %10 = math.exp %9 : vector<2x12xf32>
    %cst_5 = arith.constant dense<0.000000e+00> : vector<2xf32>
    %11 = vector.multi_reduction <add>, %10, %cst_5 [1] : vector<2x12xf32> to vector<2xf32>
    %12 = vector.shape_cast %11 : vector<2xf32> to vector<2x1xf32>
    %13 = vector.broadcast %12 : vector<2x1xf32> to vector<2x12xf32>
    %14 = arith.divf %10, %13 : vector<2x12xf32>
    %15 = vector.shape_cast %14 : vector<2x12xf32> to vector<2x12x1xf32>
    %16 = vector.broadcast %15 : vector<2x12x1xf32> to vector<2x12x32xf32>
    %17 = arith.mulf %16, %0 : vector<2x12x32xf32>
    %cst_6 = arith.constant dense<0.000000e+00> : vector<2x32xf32>
    %18 = vector.multi_reduction <add>, %17, %cst_6 [1] : vector<2x12x32xf32> to vector<2x32xf32>
    %c0_7 = arith.constant 0 : index
    %c0_8 = arith.constant 0 : index
    %19 = vector.load %arg2[%c0_7, %c0_8] : memref<32x32xf32, #tpu.memory_space<vmem>>, vector<32x32xf32>
    %cst_9 = arith.constant dense<0.000000e+00> : vector<2x32xf32>
    %20 = tpu.matmul %18, %19, %cst_9 {dimension_numbers = #tpu.dot_dimension_numbers<[1], [0], [0], [1], [0, 0, 1, 1], [], []>} : vector<2x32xf32>, vector<32x32xf32>, vector<2x32xf32> -> vector<2x32xf32>
    %c0_10 = arith.constant 0 : index
    %c0_11 = arith.constant 0 : index
    %21 = vector.load %arg4[%c0_10, %c0_11] : memref<2x32xf32, #tpu.memory_space<vmem>>, vector<2x32xf32>
    tpu.vector_store %arg4[%c0_10, %c0_11], %20 {strides = array<i32>} : memref<2x32xf32, #tpu.memory_space<vmem>>, vector<2x32xf32>,
    return
  }
  func.func @transform_0(%arg0: i32) -> (i32, i32) {
    %c0_i32 = arith.constant 0 : i32
    %c0_i32_0 = arith.constant 0 : i32
    %c0_i32_1 = arith.constant 0 : i32
    return %c0_i32, %c0_i32_0 : i32, i32
  }
  func.func @transform_1(%arg0: i32) -> (i32, i32) {
    %c0_i32 = arith.constant 0 : i32
    %c0_i32_0 = arith.constant 0 : i32
    %c0_i32_1 = arith.constant 0 : i32
    return %c0_i32, %c0_i32_0 : i32, i32
  }
  func.func @transform_2(%arg0: i32) -> (i32, i32, i32) {
    %c0_i32 = arith.constant 0 : i32
    %c0_i32_0 = arith.constant 0 : i32
    %c0_i32_1 = arith.constant 0 : i32
    return %arg0, %c0_i32, %c0_i32_0 : i32, i32, i32
  }
  func.func @transform_3(%arg0: i32) -> (i32, i32) {
    %c0_i32 = arith.constant 0 : i32
    %c0_i32_0 = arith.constant 0 : i32
    return %arg0, %c0_i32 : i32, i32
  }
}

</mosaic_0001>

<bundles_post_ra>
// kernel: hidden_attention_cls_emb.1
= control target key start
LH: loop header
LB: loop body
LE: loop exit
PB: predicated region body
PF: predicated region fallthrough
CT: control target
= control target key end

     0   :  { %vm30_vm0 = vcmask 261120   ;;  %s464_s0 = inlined_call_operand.vmem [shape: f32[1,32], index: 0, kind: input, shape index: {}]   ;;  %s465_s1 = inlined_call_operand.vmem [shape: f32[32,32], index: 1, kind: input, shape index: {}]   ;;  %s466_s2 = inlined_call_operand.vmem [shape: f32[2,12,32], index: 2, kind: input, shape index: {}]   ;;  %s467_s3 = inlined_call_operand.hbm [shape: f32[2,32], index: 3, kind: output, shape index: {}]  }
   0x1   :  { %v388_v0 = vld [vmem:[%s466_s2 + $0x10] sm:$0xff]  ;;  %v293_v1 = vld [vmem:[%s464_s0] ss:$0 sm:$0xff]  ;;  %v403_v5 = vld [vmem:[%s466_s2 + $0x18] sm:$0xf] }
   0x2   :  { %v396_v2 = vld [vmem:[%s466_s2] sm:$0xff]  ;;  %v28_v3 = vmul.f32 %v293_v1, %v388_v0  ;;  %v408_v6 = vld [vmem:[%s466_s2 + $0x8] sm:$0xf] }
   0x3   :  { %v26_v4 = vmul.f32 %v293_v1, %v396_v2 }
   0x4   :  { %8 = vsyncpa [#allocation3], 0  ;;  %v29_v7 = vmul.f32 %v293_v1, %v403_v5  ;;  %vm34_vm1 = vcmask 257024   ;;  %v27_v8 = vmul.f32 %v293_v1, %v408_v6  ;;  %v38_v9 = vsel %vm30_vm0, %v28_v3, 0.0 }
   0x5   :  { %v31_v10 = vsel %vm30_vm0, %v26_v4, 0.0  ;;  %39 = vadd.xlane.f32.xlu1 %v38_v9  ;;  %v48_v13 = vlaneseq  ;;  %vm59_vm2 = vcmask 130112   ;;  %vm70_vm3 = vcmask 1041409  }
   0x6   :  { %32 = vadd.xlane.f32.xlu0 %v31_v10  ;;  %v41_v11 = vsel %vm34_vm1, %v29_v7, 0.0  ;;  %v35_v12 = vsel %vm34_vm1, %v27_v8, 0.0  ;;  %vm73_vm4 = vcmask 91136   ;;  %v360_v31 = vmov 0   ;;  %v198_v10 = vld [vmem:[%s465_s1] sm:$0xff] }
   0x7   :  { %v49_v14 = vand.u32 127, %v48_v13  ;;  %v416_v15 = vshrl.u32 %v48_v13, 7  ;;  %323 = vset.pattern.permute.xlu0 %v360_v31  ;;  %322 = vset.pattern.permute.xlu1 %v360_v31  ;;  %v361_v13 = vmov 0.0|0.0   ;;  %vm362_vm5 = vmmov 0  }
   0x8   :  { %311 = vmatprep.subr.bf16.mxu0 %v361_v13  ;;  %vm277_vm6 = vcmask 254976  }
   0x9   :  { %42 = vadd.xlane.f32.xlu1 %v41_v11  ;;  %v54_v16 = vadd.s32 4294967288, %v49_v14  ;;  %v52_v19 = vsub.s32 %v49_v14, %v416_v15  ;;  %v80_v32 = vsub.s32 0, %v416_v15  ;;  %v84_v33 = vsub.s32 1, %v416_v15  ;;  %v199_v11 = vld [vmem:[%s465_s1 + $0x8] sm:$0xff]  ;;  %v200_v14 = vld [vmem:[%s465_s1 + $0x10] sm:$0xff] }
   0xa   :  { %36 = vadd.xlane.f32.xlu0 %v35_v12  ;;  %v312_v12 = vpack.c.bf16 %v199_v11, %v198_v10 }
   0xb   :  { %v57_v20 = vsub.s32 %v54_v16, %v416_v15  ;;  %v201_v15 = vld [vmem:[%s465_s1 + $0x18] sm:$0xff]  ;;  %s364_s1 = smov [#allocation2]  }
   0xc   :  { %313 = vmatpush3.bf16.msra.mxu0 %v312_v12  ;;  %v315_v16 = vpack.c.bf16 %v201_v15, %v200_v14  ;;  %s285_s28 = sshll.u32 %s364_s1, 4  ;;  %s286_s28 = int_to_ptr.vmem [resolvable:$true] %s285_s28 }
   0xd   :  { %314 = vmatprep.subr.bf16.mxu0 %v361_v13  ;;  %s336_s29 = scalar_lea.vmem %s286_s28, 32  ;;  %p341_p1 = scmp.lt.s32.totalorder %s286_s28, %s286_s28 }
   0xe   :  { %p337_p0 = scmp.ne.s32.totalorder %s286_s28, %s336_s29  ;;  %p342_p2 = scmp.lt.s32.totalorder %s336_s29, %s336_s29 }
  0x10   :  { %316 = vmatpush3.bf16.msra.mxu0 %v315_v16  ;;  %p343_p3 = por %p342_p2, %p341_p1 }
  0x12   :  { %p344_p4 = pnand %p343_p3, %p337_p0 }
  0x92   :  { %v40_v17 = vpop.xlane.xlu1 %39 }
  0x93   :  { %v33_v18 = vpop.xlane.xlu0 %32  ;;  %v64_v23 = vrot.slane %v40_v17, %v52_v19 }
  0x94   :  { %v53_v24 = vrot.slane %v33_v18, %v52_v19 }
  0x96   :  { %v43_v21 = vpop.xlane.xlu1 %42 }
  0x97   :  { %v37_v22 = vpop.xlane.xlu0 %36  ;;  %v68_v25 = vrot.slane %v43_v21, %v57_v20 }
  0x98   :  { %v58_v26 = vrot.slane %v37_v22, %v57_v20 }
  0x99   :  { %v69_v28 = vsel %vm59_vm2, %v68_v25, %v64_v23 }
  0x9a   :  { %v60_v27 = vsel %vm59_vm2, %v58_v26, %v53_v24 }
  0x9b   :  { %v71_v29 = vsel %vm70_vm3, %v69_v28, %v60_v27 }
  0x9c   :  { %v74_v30 = vsel %vm73_vm4, %v71_v29, -inf }
  0x9d   :  { %75 = vmax.xlane.f32.xlu0 %v74_v30 }
 0x12a   :  { %v76_v34 = vpop.xlane.xlu0 %75 }
 0x12b   :  { %v81_v35 = vrot.slane %v76_v34, %v80_v32  ;;  %v85_v36 = vrot.slane %v76_v34, %v84_v33 }
 0x12d   :  { %v88_v37 = vsub.f32 %v33_v18, %v81_v35  ;;  %v89_v38 = vsub.f32 %v37_v22, %v81_v35  ;;  %v90_v39 = vsub.f32 %v40_v17, %v85_v36  ;;  %v91_v42 = vsub.f32 %v43_v21, %v85_v36 }
 0x12e   :  { %v363_v17 = vmov 0.0  }
 0x12f   :  { %v92_v40 = vmul.f32 1.442695, %v88_v37  ;;  %v94_v41 = vmul.f32 1.442695, %v89_v38  ;;  %v96_v43 = vmul.f32 1.442695, %v90_v39  ;;  %308 = vmatprep.mubr.msk.f32.mxu0 %vm362_vm5, %v363_v17 }
 0x130   :  { %v98_v44 = vmul.f32 1.442695, %v91_v42 }
 0x131   :  { %324 = vpow2.f32 %v92_v40 }
 0x132   :  { %326 = vpow2.f32 %v94_v41 }
 0x133   :  { %328 = vpow2.f32 %v96_v43 }
 0x134   :  { %330 = vpow2.f32 %v98_v44 }
 0x13b   :  { %v325_v45 = vpop.eup %324 }
 0x13c   :  { %v327_v46 = vpop.eup %326  ;;  %105 = vperm.xlu1 %322, %v325_v45  }
 0x13d   :  { %108 = vperm.xlu0 %323, %v327_v46   ;;  %v329_v47 = vpop.eup %328 }
 0x13e   :  { %v331_v48 = vpop.eup %330 }
 0x140   :  { %111 = vperm.xlu1 %322, %v329_v47  }
 0x144   :  { %114 = vperm.xlu1 %322, %v331_v48  }
 0x1bb   :  { %v106_v49 = vpop.permute.xlu1 %105 }
 0x1bc   :  { %v109_v50 = vpop.permute.xlu0 %108  ;;  %v119_v53 = vrot.slane %v106_v49, %v52_v19 }
 0x1bd   :  { %v123_v52 = vrot.slane %v109_v50, %v57_v20 }
 0x1bf   :  { %v112_v51 = vpop.permute.xlu1 %111  ;;  %v124_v57 = vsel %vm59_vm2, %v123_v52, %v119_v53 }
 0x1c0   :  { %v128_v55 = vrot.slane %v112_v51, %v52_v19 }
 0x1c3   :  { %v115_v54 = vpop.permute.xlu1 %114 }
 0x1c4   :  { %v132_v56 = vrot.slane %v115_v54, %v57_v20 }
 0x1c6   :  { %v133_v58 = vsel %vm59_vm2, %v132_v56, %v128_v55 }
 0x1c7   :  { %v134_v59 = vsel %vm70_vm3, %v133_v58, %v124_v57 }
 0x1c8   :  { %v136_v60 = vsel %vm73_vm4, %v134_v59, 0.0 }
 0x1c9   :  { %137 = vadd.xlane.f32.xlu1 %v136_v60 }
 0x256   :  { %v138_v61 = vpop.xlane.xlu1 %137 }
 0x257   :  { %v143_v62 = vrot.slane %v138_v61, %v80_v32  ;;  %v147_v63 = vrot.slane %v138_v61, %v84_v33 }
 0x259   :  { %332 = vrcp.f32 %v143_v62 }
 0x25a   :  { %334 = vrcp.f32 %v147_v63 }
 0x263   :  { %v333_v1 = vpop.eup %332 }
 0x264   :  { %v151_v3 = vmul.f32 %v333_v1, %v325_v45  ;;  %v152_v4 = vmul.f32 %v333_v1, %v327_v46  ;;  %v335_v7 = vpop.eup %334 }
 0x265   :  { %v154_v8 = vmul.f32 %v335_v7, %v329_v47  ;;  %v155_v9 = vmul.f32 %v335_v7, %v331_v48 }
 0x266   :  { %158 = vperm.xlu0 %323, %v151_v3  }
 0x26a   :  { %163 = vperm.xlu0 %323, %v152_v4  }
 0x26e   :  { %168 = vperm.xlu0 %323, %v154_v8  }
 0x272   :  { %173 = vperm.xlu0 %323, %v155_v9  }
 0x2e5   :  { %v159_v18 = vpop.permute.xlu0 %158 }
 0x2e6   :  { %v176_v19 = vmul.f32 %v159_v18, %v396_v2 }
 0x2e8   :  { %v180_v22 = vsel %vm30_vm0, %v176_v19, 0.0 }
 0x2e9   :  { %v164_v20 = vpop.permute.xlu0 %163 }
 0x2ea   :  { %v177_v21 = vmul.f32 %v164_v20, %v408_v6 }
 0x2ec   :  { %v181_v23 = vsel %vm34_vm1, %v177_v21, 0.0 }
 0x2ed   :  { %v182_v24 = vadd.f32 %v181_v23, %v180_v22  ;;  %v169_v25 = vpop.permute.xlu0 %168 }
 0x2ee   :  { %v178_v27 = vmul.f32 %v169_v25, %v388_v0 }
 0x2ef   :  { %v183_v26 = vrot.slane %v182_v24, 4 }
 0x2f0   :  { %v189_v31 = vsel %vm30_vm0, %v178_v27, 0.0 }
 0x2f1   :  { %v184_v28 = vadd.f32 %v183_v26, %v182_v24  ;;  %v174_v29 = vpop.permute.xlu0 %173 }
 0x2f2   :  { %v179_v30 = vmul.f32 %v174_v29, %v403_v5 }
 0x2f3   :  { %v185_v32 = vrot.slane %v184_v28, 2 }
 0x2f4   :  { %v190_v2 = vsel %vm34_vm1, %v179_v30, 0.0 }
 0x2f5   :  { %v191_v33 = vadd.f32 %v190_v2, %v189_v31  ;;  %v186_v34 = vadd.f32 %v185_v32, %v184_v28 }
 0x2f7   :  { %v192_v6 = vrot.slane %v191_v33, 4  ;;  %v187_v37 = vrot.slane %v186_v34, 1 }
 0x2f9   :  { %v193_v35 = vadd.f32 %v192_v6, %v191_v33  ;;  %v188_v40 = vadd.f32 %v187_v37, %v186_v34 }
 0x2fb   :  { %v194_v36 = vrot.slane %v193_v35, 2 }
 0x2fd   :  { %v195_v38 = vadd.f32 %v194_v36, %v193_v35 }
 0x2ff   :  { %v196_v39 = vrot.slane %v195_v38, 1 }
 0x301   :  { %v197_v41 = vadd.f32 %v196_v39, %v195_v38 }
 0x303   :  { %v204_v0 = vsel %vm70_vm3, %v197_v41, %v188_v40 }
 0x304   :  { %309 = vmatmul.mubr.msk.f32.vlgmr.msra.gmra.mrb[0].mxu0 %vm30_vm0, %v204_v0 }
 0x3d7   :  { %v273_v5 = vpop.f32.mrb[0].mxu0 }
 0x3d8   :  { %278 = vst.msk [vmem:[#allocation2] sm:$0x3] %vm277_vm6, %v273_v5  ;;  %v310_v42 = vpop.f32.mrb[1].mxu0 }
 0x3d9   :  { %347 = shalt.err (!%p344_p4)
}
 0x3da   :  { %s348_s5 = scalar_lea.hbm %s467_s3, 32 }
 0x3db   :  { %p349_p5 = scmp.ne.s32.totalorder %s467_s3, %s348_s5  ;;  %p352_p6 = scmp.lt.u32.totalorder %s348_s5, %s467_s3 }
 0x3dd   :  { %p354_p7 = pnand %p352_p6, %p349_p5 }
 0x3df   :  { %357 = shalt.err (!%p354_p7)
}
 0x3e0   :  { %288 = dma.vmem_to_hbm [thread:$0]  %s286_s28, 32, %s467_s3, [#allocation3]  }
 0x3e1   :  { %358 = dma.done.wait [#allocation3], 32  }
 0x3e2   :  { %359 = vsyncadd [#allocation3], 4294967264 }
 0x3e3   :  { %292 = vsyncpa [#allocation3], 1 }

</bundles_post_ra>
